<compile_context>
chip_gen: v5e
topology: v5e:2x2
jax: 0.10.0
libtpu: 0.0.40
codegen_flags: <defaults>
</compile_context>

<pallas_src>
import jax
import jax.numpy as jnp
from jax.experimental import pallas as pl
from jax.experimental.pallas import tpu as pltpu

HIDDEN = 5
INPUT_SIZE = 1
LANE = 128
SUB = 8

# Offsets inside the flat SMEM parameter vector (f32[36]).
_W_I = 0 * HIDDEN      # input weights, i gate      (5)
_W_G = 1 * HIDDEN      # input weights, g gate      (5)
_W_O = 2 * HIDDEN      # input weights, o gate      (5)
_B_I = 3 * HIDDEN      # fused bias, i gate         (5)
_B_G = 4 * HIDDEN      # fused bias, g gate         (5)
_B_O = 5 * HIDDEN      # fused bias, o gate         (5)
_FC_W = 6 * HIDDEN     # fc weight                  (5)
_FC_B = 7 * HIDDEN     # fc bias                    (1)
_N_PARAMS = 7 * HIDDEN + 1


def lstm_fc_kernel(p_ref, x_ref, out_ref):
    """One LSTM cell step (zero init state, dead f gate removed) + Linear(5->1).

    p_ref:   (36,) f32 in SMEM   — scalar parameters
    x_ref:   (BR, 128) f32       — batch packed densely on sublanes AND lanes
    out_ref: (BR, 128) f32       — lane/sublane-dense output
    """
    x = x_ref[...]                                   # (BR, 128)
    y = jnp.zeros_like(x)
    # Static unroll over the 5 real hidden units: scalar (SMEM) x vreg broadcasts only.
    for j in range(HIDDEN):
        i = jax.nn.sigmoid(p_ref[_W_I + j] * x + p_ref[_B_I + j])
        g = jnp.tanh(p_ref[_W_G + j] * x + p_ref[_B_G + j])
        o = jax.nn.sigmoid(p_ref[_W_O + j] * x + p_ref[_B_O + j])
        # c0 == 0  =>  c = i*g ; accumulate the fc projection immediately.
        y = y + p_ref[_FC_W + j] * (o * jnp.tanh(i * g))
    out_ref[...] = y + p_ref[_FC_B]


def _pack_params(params):
    """Fuse all needed parameters into a single flat f32[36] vector (SMEM-resident).

    PyTorch gate order in weight_ih_l0 / biases is [i, f, g, o]; the f gate is dropped
    entirely (f * c0 == 0) and weight_hh_l0 is unused (h0 == 0).
    """
    H = HIDDEN
    w_ih = params["weight_ih_l0"].astype(jnp.float32).reshape(4 * H)   # input_size == 1
    bias = (params["bias_ih_l0"] + params["bias_hh_l0"]).astype(jnp.float32)
    fc_w = params["fc_weight"].astype(jnp.float32).reshape(H)
    fc_b = params["fc_bias"].astype(jnp.float32).reshape(1)
    return jnp.concatenate([
        w_ih[0 * H:1 * H],      # w_i
        w_ih[2 * H:3 * H],      # w_g
        w_ih[3 * H:4 * H],      # w_o
        bias[0 * H:1 * H],      # b_i
        bias[2 * H:3 * H],      # b_g
        bias[3 * H:4 * H],      # b_o
        fc_w,                   # fc weight
        fc_b,                   # fc bias
    ])


def lstm_network_forward(x, params, *, block_rows=32):
    """x: (B, 1) float32 -> (B, 1) float32 (matches LSTMNetwork.forward)."""
    assert block_rows % SUB == 0
    B = x.shape[0]
    xf = x.astype(jnp.float32).reshape(-1)
    p = _pack_params(params)

    # Pack the batch densely onto (sublane, lane): rows of 128, rows multiple of 8.
    rows = pl.cdiv(pl.cdiv(B, LANE), SUB) * SUB        # minimum sublane-aligned rows
    br = min(block_rows, rows)                         # single grid step for small/medium B
    rows = pl.cdiv(rows, br) * br                      # rows divisible by the block size
    b_pad = rows * LANE

    x2 = jnp.pad(xf, (0, b_pad - B)).reshape(rows, LANE)

    out = pl.pallas_call(
        lstm_fc_kernel,
        out_shape=jax.ShapeDtypeStruct((rows, LANE), jnp.float32),
        grid_spec=pltpu.PrefetchScalarGridSpec(
            num_scalar_prefetch=0,
            grid=(rows // br,),
            in_specs=[
                # Scalar parameters: whole array, SMEM-resident (no VMEM param block).
                pl.BlockSpec(memory_space=pltpu.MemorySpace.SMEM),
                # Batch tiles: fully dense (br, 128) vreg blocks.
                pl.BlockSpec((br, LANE), lambda i: (i, 0)),
            ],
            out_specs=pl.BlockSpec((br, LANE), lambda i: (i, 0)),
        ),
        compiler_params=pltpu.CompilerParams(
            dimension_semantics=("parallel",)),
        cost_estimate=pl.CostEstimate(
            flops=10 * HIDDEN * b_pad,                     # muls/adds per hidden unit
            transcendentals=4 * HIDDEN * b_pad,            # 2 sigmoid + 2 tanh per hidden unit
            bytes_accessed=2 * 4 * b_pad + 4 * _N_PARAMS,  # x in + y out + params
        ),
    )(p, x2)

    return out.reshape(-1)[:B].reshape(B, 1)


def init_params(key):
    """Deterministic init matching PyTorch's shapes / uniform(-k, k), k = 1/sqrt(H)."""
    k = 1.0 / jnp.sqrt(jnp.float32(HIDDEN))
    ks = jax.random.split(key, 6)
    u = lambda kk, shape: jax.random.uniform(kk, shape, jnp.float32, -k, k)
    return {
        "weight_ih_l0": u(ks[0], (4 * HIDDEN, INPUT_SIZE)),  # (20, 1)
        "weight_hh_l0": u(ks[1], (4 * HIDDEN, HIDDEN)),      # (20, 5) - unused (h0 == 0)
        "bias_ih_l0":   u(ks[2], (4 * HIDDEN,)),             # (20,)
        "bias_hh_l0":   u(ks[3], (4 * HIDDEN,)),             # (20,)
        "fc_weight":    u(ks[4], (1, HIDDEN)),               # (1, 5)
        "fc_bias":      u(ks[5], (1,)),                      # (1,)
    }


def _reference_forward(x, params):
    """Plain-JAX reference of the PyTorch forward (uses the full i,f,g,o gate set)."""
    gates = x @ params["weight_ih_l0"].T + params["bias_ih_l0"] + params["bias_hh_l0"]
    i = jax.nn.sigmoid(gates[:, 0:5])
    f = jax.nn.sigmoid(gates[:, 5:10])      # multiplied by c0 == 0 in the real recurrence
    g = jnp.tanh(gates[:, 10:15])
    o = jax.nn.sigmoid(gates[:, 15:20])
    c = f * 0.0 + i * g
    h = o * jnp.tanh(c)
    return h @ params["fc_weight"].T + params["fc_bias"]


if __name__ == "__main__":
    key = jax.random.PRNGKey(0)
    k_param, k_x = jax.random.split(key)
    params = init_params(k_param)

    # B = 1000 matches N_SAMPLES of the original spec; now a single (8, 128) grid step.
    B = 1000
    x = jax.random.uniform(k_x, (B, 1), jnp.float32, -6.0, 6.0)
    y = jax.block_until_ready(lstm_network_forward(x, params))
    y_ref = _reference_forward(x, params)
    assert y.shape == (B, 1)
    assert jnp.allclose(y, y_ref, atol=1e-5, rtol=1e-5)

    # Larger batch to exercise the multi-block "parallel" grid path (rows=64, grid=(2,)).
    B2 = 5000
    x2 = jax.random.uniform(jax.random.PRNGKey(7), (B2, 1), jnp.float32, -6.0, 6.0)
    y2 = jax.block_until_ready(lstm_network_forward(x2, params))
    y2_ref = _reference_forward(x2, params)
    assert y2.shape == (B2, 1)
    assert jnp.allclose(y2, y2_ref, atol=1e-5, rtol=1e-5)

    print("KERNEL_OK")
</pallas_src>

<mosaic_0001>
module attributes {stable_mosaic.version = 11 : i64} {
  func.func @lstm_fc_kernel(%arg0: i32, %arg1: memref<36xf32, #tpu.memory_space<smem>>, %arg2: memref<8x128xf32, #tpu.memory_space<vmem>>, %arg3: memref<8x128xf32, #tpu.memory_space<vmem>>) attributes {dimension_semantics = [#tpu.dimension_semantics<parallel>], iteration_bounds = array<i64: 1>, scalar_prefetch = 0 : i64, scratch_operands = 0 : i64, tpu.core_type = #tpu.core_type<tc>, window_params = [{transform_indices = @transform_0, window_bounds = array<i64: 36>}, {transform_indices = @transform_1, window_bounds = array<i64: 8, 128>}, {transform_indices = @transform_2, window_bounds = array<i64: 8, 128>}]} {
    %c0 = arith.constant 0 : index
    %c0_0 = arith.constant 0 : index
    %0 = vector.load %arg2[%c0, %c0_0] : memref<8x128xf32, #tpu.memory_space<vmem>>, vector<8x128xf32>
    %cst = arith.constant 0.000000e+00 : f32
    %1 = vector.broadcast %cst : f32 to vector<8x128xf32>
    %c0_1 = arith.constant 0 : index
    %2 = memref.load %arg1[%c0_1] : memref<36xf32, #tpu.memory_space<smem>>
    %3 = vector.broadcast %2 : f32 to vector<8x128xf32>
    %4 = arith.mulf %3, %0 : vector<8x128xf32>
    %c15 = arith.constant 15 : index
    %5 = memref.load %arg1[%c15] : memref<36xf32, #tpu.memory_space<smem>>
    %6 = vector.broadcast %5 : f32 to vector<8x128xf32>
    %7 = arith.addf %4, %6 : vector<8x128xf32>
    %8 = arith.negf %7 : vector<8x128xf32>
    %9 = math.exp %8 : vector<8x128xf32>
    %cst_2 = arith.constant 1.000000e+00 : f32
    %10 = vector.broadcast %cst_2 : f32 to vector<8x128xf32>
    %11 = arith.addf %10, %9 : vector<8x128xf32>
    %12 = arith.divf %10, %11 : vector<8x128xf32>
    %c5 = arith.constant 5 : index
    %13 = memref.load %arg1[%c5] : memref<36xf32, #tpu.memory_space<smem>>
    %14 = vector.broadcast %13 : f32 to vector<8x128xf32>
    %15 = arith.mulf %14, %0 : vector<8x128xf32>
    %c20 = arith.constant 20 : index
    %16 = memref.load %arg1[%c20] : memref<36xf32, #tpu.memory_space<smem>>
    %17 = vector.broadcast %16 : f32 to vector<8x128xf32>
    %18 = arith.addf %15, %17 : vector<8x128xf32>
    %19 = math.tanh %18 : vector<8x128xf32>
    %c10 = arith.constant 10 : index
    %20 = memref.load %arg1[%c10] : memref<36xf32, #tpu.memory_space<smem>>
    %21 = vector.broadcast %20 : f32 to vector<8x128xf32>
    %22 = arith.mulf %21, %0 : vector<8x128xf32>
    %c25 = arith.constant 25 : index
    %23 = memref.load %arg1[%c25] : memref<36xf32, #tpu.memory_space<smem>>
    %24 = vector.broadcast %23 : f32 to vector<8x128xf32>
    %25 = arith.addf %22, %24 : vector<8x128xf32>
    %26 = arith.negf %25 : vector<8x128xf32>
    %27 = math.exp %26 : vector<8x128xf32>
    %cst_3 = arith.constant 1.000000e+00 : f32
    %28 = vector.broadcast %cst_3 : f32 to vector<8x128xf32>
    %29 = arith.addf %28, %27 : vector<8x128xf32>
    %30 = arith.divf %28, %29 : vector<8x128xf32>
    %c30 = arith.constant 30 : index
    %31 = memref.load %arg1[%c30] : memref<36xf32, #tpu.memory_space<smem>>
    %32 = arith.mulf %12, %19 : vector<8x128xf32>
    %33 = math.tanh %32 : vector<8x128xf32>
    %34 = arith.mulf %30, %33 : vector<8x128xf32>
    %35 = vector.broadcast %31 : f32 to vector<8x128xf32>
    %36 = arith.mulf %35, %34 : vector<8x128xf32>
    %37 = arith.addf %1, %36 : vector<8x128xf32>
    %c1 = arith.constant 1 : index
    %38 = memref.load %arg1[%c1] : memref<36xf32, #tpu.memory_space<smem>>
    %39 = vector.broadcast %38 : f32 to vector<8x128xf32>
    %40 = arith.mulf %39, %0 : vector<8x128xf32>
    %c16 = arith.constant 16 : index
    %41 = memref.load %arg1[%c16] : memref<36xf32, #tpu.memory_space<smem>>
    %42 = vector.broadcast %41 : f32 to vector<8x128xf32>
    %43 = arith.addf %40, %42 : vector<8x128xf32>
    %44 = arith.negf %43 : vector<8x128xf32>
    %45 = math.exp %44 : vector<8x128xf32>
    %cst_4 = arith.constant 1.000000e+00 : f32
    %46 = vector.broadcast %cst_4 : f32 to vector<8x128xf32>
    %47 = arith.addf %46, %45 : vector<8x128xf32>
    %48 = arith.divf %46, %47 : vector<8x128xf32>
    %c6 = arith.constant 6 : index
    %49 = memref.load %arg1[%c6] : memref<36xf32, #tpu.memory_space<smem>>
    %50 = vector.broadcast %49 : f32 to vector<8x128xf32>
    %51 = arith.mulf %50, %0 : vector<8x128xf32>
    %c21 = arith.constant 21 : index
    %52 = memref.load %arg1[%c21] : memref<36xf32, #tpu.memory_space<smem>>
    %53 = vector.broadcast %52 : f32 to vector<8x128xf32>
    %54 = arith.addf %51, %53 : vector<8x128xf32>
    %55 = math.tanh %54 : vector<8x128xf32>
    %c11 = arith.constant 11 : index
    %56 = memref.load %arg1[%c11] : memref<36xf32, #tpu.memory_space<smem>>
    %57 = vector.broadcast %56 : f32 to vector<8x128xf32>
    %58 = arith.mulf %57, %0 : vector<8x128xf32>
    %c26 = arith.constant 26 : index
    %59 = memref.load %arg1[%c26] : memref<36xf32, #tpu.memory_space<smem>>
    %60 = vector.broadcast %59 : f32 to vector<8x128xf32>
    %61 = arith.addf %58, %60 : vector<8x128xf32>
    %62 = arith.negf %61 : vector<8x128xf32>
    %63 = math.exp %62 : vector<8x128xf32>
    %cst_5 = arith.constant 1.000000e+00 : f32
    %64 = vector.broadcast %cst_5 : f32 to vector<8x128xf32>
    %65 = arith.addf %64, %63 : vector<8x128xf32>
    %66 = arith.divf %64, %65 : vector<8x128xf32>
    %c31 = arith.constant 31 : index
    %67 = memref.load %arg1[%c31] : memref<36xf32, #tpu.memory_space<smem>>
    %68 = arith.mulf %48, %55 : vector<8x128xf32>
    %69 = math.tanh %68 : vector<8x128xf32>
    %70 = arith.mulf %66, %69 : vector<8x128xf32>
    %71 = vector.broadcast %67 : f32 to vector<8x128xf32>
    %72 = arith.mulf %71, %70 : vector<8x128xf32>
    %73 = arith.addf %37, %72 : vector<8x128xf32>
    %c2 = arith.constant 2 : index
    %74 = memref.load %arg1[%c2] : memref<36xf32, #tpu.memory_space<smem>>
    %75 = vector.broadcast %74 : f32 to vector<8x128xf32>
    %76 = arith.mulf %75, %0 : vector<8x128xf32>
    %c17 = arith.constant 17 : index
    %77 = memref.load %arg1[%c17] : memref<36xf32, #tpu.memory_space<smem>>
    %78 = vector.broadcast %77 : f32 to vector<8x128xf32>
    %79 = arith.addf %76, %78 : vector<8x128xf32>
    %80 = arith.negf %79 : vector<8x128xf32>
    %81 = math.exp %80 : vector<8x128xf32>
    %cst_6 = arith.constant 1.000000e+00 : f32
    %82 = vector.broadcast %cst_6 : f32 to vector<8x128xf32>
    %83 = arith.addf %82, %81 : vector<8x128xf32>
    %84 = arith.divf %82, %83 : vector<8x128xf32>
    %c7 = arith.constant 7 : index
    %85 = memref.load %arg1[%c7] : memref<36xf32, #tpu.memory_space<smem>>
    %86 = vector.broadcast %85 : f32 to vector<8x128xf32>
    %87 = arith.mulf %86, %0 : vector<8x128xf32>
    %c22 = arith.constant 22 : index
    %88 = memref.load %arg1[%c22] : memref<36xf32, #tpu.memory_space<smem>>
    %89 = vector.broadcast %88 : f32 to vector<8x128xf32>
    %90 = arith.addf %87, %89 : vector<8x128xf32>
    %91 = math.tanh %90 : vector<8x128xf32>
    %c12 = arith.constant 12 : index
    %92 = memref.load %arg1[%c12] : memref<36xf32, #tpu.memory_space<smem>>
    %93 = vector.broadcast %92 : f32 to vector<8x128xf32>
    %94 = arith.mulf %93, %0 : vector<8x128xf32>
    %c27 = arith.constant 27 : index
    %95 = memref.load %arg1[%c27] : memref<36xf32, #tpu.memory_space<smem>>
    %96 = vector.broadcast %95 : f32 to vector<8x128xf32>
    %97 = arith.addf %94, %96 : vector<8x128xf32>
    %98 = arith.negf %97 : vector<8x128xf32>
    %99 = math.exp %98 : vector<8x128xf32>
    %cst_7 = arith.constant 1.000000e+00 : f32
    %100 = vector.broadcast %cst_7 : f32 to vector<8x128xf32>
    %101 = arith.addf %100, %99 : vector<8x128xf32>
    %102 = arith.divf %100, %101 : vector<8x128xf32>
    %c32 = arith.constant 32 : index
    %103 = memref.load %arg1[%c32] : memref<36xf32, #tpu.memory_space<smem>>
    %104 = arith.mulf %84, %91 : vector<8x128xf32>
    %105 = math.tanh %104 : vector<8x128xf32>
    %106 = arith.mulf %102, %105 : vector<8x128xf32>
    %107 = vector.broadcast %103 : f32 to vector<8x128xf32>
    %108 = arith.mulf %107, %106 : vector<8x128xf32>
    %109 = arith.addf %73, %108 : vector<8x128xf32>
    %c3 = arith.constant 3 : index
    %110 = memref.load %arg1[%c3] : memref<36xf32, #tpu.memory_space<smem>>
    %111 = vector.broadcast %110 : f32 to vector<8x128xf32>
    %112 = arith.mulf %111, %0 : vector<8x128xf32>
    %c18 = arith.constant 18 : index
    %113 = memref.load %arg1[%c18] : memref<36xf32, #tpu.memory_space<smem>>
    %114 = vector.broadcast %113 : f32 to vector<8x128xf32>
    %115 = arith.addf %112, %114 : vector<8x128xf32>
    %116 = arith.negf %115 : vector<8x128xf32>
    %117 = math.exp %116 : vector<8x128xf32>
    %cst_8 = arith.constant 1.000000e+00 : f32
    %118 = vector.broadcast %cst_8 : f32 to vector<8x128xf32>
    %119 = arith.addf %118, %117 : vector<8x128xf32>
    %120 = arith.divf %118, %119 : vector<8x128xf32>
    %c8 = arith.constant 8 : index
    %121 = memref.load %arg1[%c8] : memref<36xf32, #tpu.memory_space<smem>>
    %122 = vector.broadcast %121 : f32 to vector<8x128xf32>
    %123 = arith.mulf %122, %0 : vector<8x128xf32>
    %c23 = arith.constant 23 : index
    %124 = memref.load %arg1[%c23] : memref<36xf32, #tpu.memory_space<smem>>
    %125 = vector.broadcast %124 : f32 to vector<8x128xf32>
    %126 = arith.addf %123, %125 : vector<8x128xf32>
    %127 = math.tanh %126 : vector<8x128xf32>
    %c13 = arith.constant 13 : index
    %128 = memref.load %arg1[%c13] : memref<36xf32, #tpu.memory_space<smem>>
    %129 = vector.broadcast %128 : f32 to vector<8x128xf32>
    %130 = arith.mulf %129, %0 : vector<8x128xf32>
    %c28 = arith.constant 28 : index
    %131 = memref.load %arg1[%c28] : memref<36xf32, #tpu.memory_space<smem>>
    %132 = vector.broadcast %131 : f32 to vector<8x128xf32>
    %133 = arith.addf %130, %132 : vector<8x128xf32>
    %134 = arith.negf %133 : vector<8x128xf32>
    %135 = math.exp %134 : vector<8x128xf32>
    %cst_9 = arith.constant 1.000000e+00 : f32
    %136 = vector.broadcast %cst_9 : f32 to vector<8x128xf32>
    %137 = arith.addf %136, %135 : vector<8x128xf32>
    %138 = arith.divf %136, %137 : vector<8x128xf32>
    %c33 = arith.constant 33 : index
    %139 = memref.load %arg1[%c33] : memref<36xf32, #tpu.memory_space<smem>>
    %140 = arith.mulf %120, %127 : vector<8x128xf32>
    %141 = math.tanh %140 : vector<8x128xf32>
    %142 = arith.mulf %138, %141 : vector<8x128xf32>
    %143 = vector.broadcast %139 : f32 to vector<8x128xf32>
    %144 = arith.mulf %143, %142 : vector<8x128xf32>
    %145 = arith.addf %109, %144 : vector<8x128xf32>
    %c4 = arith.constant 4 : index
    %146 = memref.load %arg1[%c4] : memref<36xf32, #tpu.memory_space<smem>>
    %147 = vector.broadcast %146 : f32 to vector<8x128xf32>
    %148 = arith.mulf %147, %0 : vector<8x128xf32>
    %c19 = arith.constant 19 : index
    %149 = memref.load %arg1[%c19] : memref<36xf32, #tpu.memory_space<smem>>
    %150 = vector.broadcast %149 : f32 to vector<8x128xf32>
    %151 = arith.addf %148, %150 : vector<8x128xf32>
    %152 = arith.negf %151 : vector<8x128xf32>
    %153 = math.exp %152 : vector<8x128xf32>
    %cst_10 = arith.constant 1.000000e+00 : f32
    %154 = vector.broadcast %cst_10 : f32 to vector<8x128xf32>
    %155 = arith.addf %154, %153 : vector<8x128xf32>
    %156 = arith.divf %154, %155 : vector<8x128xf32>
    %c9 = arith.constant 9 : index
    %157 = memref.load %arg1[%c9] : memref<36xf32, #tpu.memory_space<smem>>
    %158 = vector.broadcast %157 : f32 to vector<8x128xf32>
    %159 = arith.mulf %158, %0 : vector<8x128xf32>
    %c24 = arith.constant 24 : index
    %160 = memref.load %arg1[%c24] : memref<36xf32, #tpu.memory_space<smem>>
    %161 = vector.broadcast %160 : f32 to vector<8x128xf32>
    %162 = arith.addf %159, %161 : vector<8x128xf32>
    %163 = math.tanh %162 : vector<8x128xf32>
    %c14 = arith.constant 14 : index
    %164 = memref.load %arg1[%c14] : memref<36xf32, #tpu.memory_space<smem>>
    %165 = vector.broadcast %164 : f32 to vector<8x128xf32>
    %166 = arith.mulf %165, %0 : vector<8x128xf32>
    %c29 = arith.constant 29 : index
    %167 = memref.load %arg1[%c29] : memref<36xf32, #tpu.memory_space<smem>>
    %168 = vector.broadcast %167 : f32 to vector<8x128xf32>
    %169 = arith.addf %166, %168 : vector<8x128xf32>
    %170 = arith.negf %169 : vector<8x128xf32>
    %171 = math.exp %170 : vector<8x128xf32>
    %cst_11 = arith.constant 1.000000e+00 : f32
    %172 = vector.broadcast %cst_11 : f32 to vector<8x128xf32>
    %173 = arith.addf %172, %171 : vector<8x128xf32>
    %174 = arith.divf %172, %173 : vector<8x128xf32>
    %c34 = arith.constant 34 : index
    %175 = memref.load %arg1[%c34] : memref<36xf32, #tpu.memory_space<smem>>
    %176 = arith.mulf %156, %163 : vector<8x128xf32>
    %177 = math.tanh %176 : vector<8x128xf32>
    %178 = arith.mulf %174, %177 : vector<8x128xf32>
    %179 = vector.broadcast %175 : f32 to vector<8x128xf32>
    %180 = arith.mulf %179, %178 : vector<8x128xf32>
    %181 = arith.addf %145, %180 : vector<8x128xf32>
    %c35 = arith.constant 35 : index
    %182 = memref.load %arg1[%c35] : memref<36xf32, #tpu.memory_space<smem>>
    %183 = vector.broadcast %182 : f32 to vector<8x128xf32>
    %184 = arith.addf %181, %183 : vector<8x128xf32>
    %c0_12 = arith.constant 0 : index
    %c0_13 = arith.constant 0 : index
    %185 = vector.load %arg3[%c0_12, %c0_13] : memref<8x128xf32, #tpu.memory_space<vmem>>, vector<8x128xf32>
    tpu.vector_store %arg3[%c0_12, %c0_13], %184 {strides = array<i32>} : memref<8x128xf32, #tpu.memory_space<vmem>>, vector<8x128xf32>,
    return
  }
  func.func @transform_0(%arg0: i32) -> i32 {
    %c0_i32 = arith.constant 0 : i32
    %c0_i32_0 = arith.constant 0 : i32
    return %c0_i32 : i32
  }
  func.func @transform_1(%arg0: i32) -> (i32, i32) {
    %c0_i32 = arith.constant 0 : i32
    %c0_i32_0 = arith.constant 0 : i32
    return %arg0, %c0_i32 : i32, i32
  }
  func.func @transform_2(%arg0: i32) -> (i32, i32) {
    %c0_i32 = arith.constant 0 : i32
    %c0_i32_0 = arith.constant 0 : i32
    return %arg0, %c0_i32 : i32, i32
  }
}

</mosaic_0001>

<bundles_post_ra>
// kernel: tpu_custom_call.1
= control target key start
LH: loop header
LB: loop body
LE: loop exit
PB: predicated region body
PF: predicated region fallthrough
CT: control target
= control target key end

     0   :  { %7 = vsyncpa [#allocation5], 0  ;;  %s917_s0 = inlined_call_operand.hbm [shape: f32[36], index: 0, kind: input, shape index: {}]   ;;  %s918_s1 = inlined_call_operand.hbm [shape: f32[8,128], index: 1, kind: input, shape index: {}]   ;;  %s919_s2 = inlined_call_operand.hbm [shape: f32[8,128], index: 2, kind: output, shape index: {}]  }
   0x1   :  { %8 = vsyncpa [#allocation3], 0 }
   0x2   :  { %9 = vsyncpa [#allocation4], 0  ;;  %s15_s11 = sshll.u32 %s917_s0, 4  ;;  %s24_s14 = sshll.u32 %s918_s1, 4  ;;  %s16_s11 = int_to_ptr.hbm [resolvable:$true] %s15_s11  ;;  %s25_s14 = int_to_ptr.hbm [resolvable:$true] %s24_s14 }
   0x3   :  { %s556_s15 = smov [#allocation2]   ;;  %s557_s16 = smov [#allocation6]  }
   0x4   :  { %18 = dma.hbm_to_smem %s16_s11, 16, %s556_s15, [#allocation5]  }
   0x5   :  { %s26_s17 = sshll.u32 %s557_s16, 4  ;;  %s27_s17 = int_to_ptr.vmem [resolvable:$true] %s26_s17 }
   0x6   :  { %29 = dma.hbm_to_vmem [thread:$0]  %s25_s14, 128, %s27_s17, [#allocation3]  }
   0x7   :  { %550 = dma.done.wait [#allocation5], 16  }
   0x8   :  { %551 = vsyncadd [#allocation5], 4294967280 }
   0x9   :  { %552 = dma.done.wait [#allocation3], 128  }
   0xa   :  { %553 = vsyncadd [#allocation3], 4294967168 }
   0xb   :  { %38 = sfence }
   0xc   :  { %s40_s18 = sld [smem:[#allocation2]]  ;;  %v580_v0 = vld [vmem:[#allocation6] sm:$0xff] }
   0xd   :  { %s382_s19 = sld [smem:[#allocation2 + $0xf]] }
   0xe   :  { %s386_s0 = sld [smem:[#allocation2 + $0xa]] }
   0xf   :  { %s387_s20 = sld [smem:[#allocation2 + $0x19]] }
  0x10   :  { %s390_s1 = sld [smem:[#allocation2 + $0x1]] }
  0x11   :  { %s391_s21 = sld [smem:[#allocation2 + $0x10]] }
  0x12   :  { %v41_v1 = vstv %s40_s18  ;;  %s395_s22 = sld [smem:[#allocation2 + $0xb]] }
  0x13   :  { %v42_v2 = vmul.f32 %v41_v1, %v580_v0  ;;  %v44_v3 = vstv %s382_s19  ;;  %s396_s23 = sld [smem:[#allocation2 + $0x1a]] }
  0x14   :  { %v73_v5 = vstv %s386_s0  ;;  %s399_s24 = sld [smem:[#allocation2 + $0x2]] }
  0x15   :  { %v45_v4 = vadd.f32 %v44_v3, %v42_v2  ;;  %v74_v7 = vmul.f32 %v73_v5, %v580_v0  ;;  %v76_v8 = vstv %s387_s20  ;;  %s400_s25 = sld [smem:[#allocation2 + $0x11]] }
  0x16   :  { %v105_v10 = vstv %s390_s1  ;;  %s404_s26 = sld [smem:[#allocation2 + $0xc]] }
  0x17   :  { %v383_v6 = vmul.f32 -1.442695, %v45_v4  ;;  %v77_v9 = vadd.f32 %v76_v8, %v74_v7  ;;  %v106_v11 = vmul.f32 %v105_v10, %v580_v0  ;;  %v108_v12 = vstv %s391_s21  ;;  %s586_s27 = sld [smem:[#allocation2 + $0x5]] }
  0x18   :  { %v137_v15 = vstv %s395_s22  ;;  %s405_s28 = sld [smem:[#allocation2 + $0x1b]]  ;;  %s558_s22 = smov [#allocation7]  }
  0x19   :  { %430 = vpow2.f32 %v383_v6  ;;  %v109_v13 = vadd.f32 %v108_v12, %v106_v11  ;;  %v388_v14 = vmul.f32 -1.442695, %v77_v9  ;;  %v138_v17 = vmul.f32 %v137_v15, %v580_v0  ;;  %s408_s29 = sld [smem:[#allocation2 + $0x3]] }
  0x1a   :  { %v140_v19 = vstv %s396_s23  ;;  %v169_v21 = vstv %s399_s24  ;;  %s592_s30 = sld [smem:[#allocation2 + $0x14]]  ;;  %s369_s23 = sshll.u32 %s558_s22, 4  ;;  %s370_s23 = int_to_ptr.vmem [resolvable:$true] %s369_s23 }
  0x1b   :  { %v392_v16 = vmul.f32 -1.442695, %v109_v13  ;;  %v170_v22 = vmul.f32 %v169_v21, %v580_v0  ;;  %v172_v23 = vstv %s400_s25  ;;  %v141_v24 = vadd.f32 %v140_v19, %v138_v17  ;;  %s594_s3 = sld [smem:[#allocation2 + $0x12]] }
  0x1c   :  { %s596_s4 = sld [smem:[#allocation2 + $0x6]]  ;;  %v201_v27 = vstv %s404_s26  ;;  %s371_s26 = sshll.u32 %s919_s2, 4  ;;  %s372_s26 = int_to_ptr.hbm [resolvable:$true] %s371_s26 }
  0x1d   :  { %432 = vpow2.f32 %v392_v16  ;;  %v173_v25 = vadd.f32 %v172_v23, %v170_v22  ;;  %v397_v29 = vmul.f32 -1.442695, %v141_v24  ;;  %v202_v32 = vmul.f32 %v201_v27, %v580_v0  ;;  %s603_s5 = sld [smem:[#allocation2 + $0x15]] }
  0x1e   :  { %434 = vpow2.f32 %v388_v14  ;;  %v204_v34 = vstv %s405_s28  ;;  %v66_v37 = vstv %s586_s27  ;;  %s609_s6 = sld [smem:[#allocation2 + $0x7]] }
  0x1f   :  { %v431_v18 = vpop.eup %430  ;;  %v401_v26 = vmul.f32 -1.442695, %v173_v25  ;;  %v233_v35 = vstv %s408_s29  ;;  %v205_v39 = vadd.f32 %v204_v34, %v202_v32  ;;  %v67_v41 = vmul.f32 %v66_v37, %v580_v0  ;;  %s618_s7 = sld [smem:[#allocation2 + $0x16]] }
  0x20   :  { %v588_v20 = vadd.f32 1.0, %v431_v18  ;;  %v234_v40 = vmul.f32 %v233_v35, %v580_v0  ;;  %v69_v46 = vstv %s592_s30  ;;  %s626_s8 = sld [smem:[#allocation2 + $0xd]] }
  0x21   :  { %v406_v42 = vmul.f32 -1.442695, %v205_v39  ;;  %v236_v43 = vstv %s594_s3  ;;  %v70_v52 = vadd.f32 %v69_v46, %v67_v41  ;;  %s634_s9 = sld [smem:[#allocation2 + $0x1c]] }
  0x22   :  { %436 = vrcp.f32 %v588_v20  ;;  %v130_v47 = vstv %s596_s4  ;;  %v237_v50 = vadd.f32 %v236_v43, %v234_v40  ;;  %vm55_vm0 = vweird.f32 %v588_v20  ;;  %s651_s10 = sld [smem:[#allocation2 + $0x4]] }
  0x23   :  { %v433_v28 = vpop.eup %432  ;;  %438 = vpow2.f32 %v401_v26  ;;  %v131_v53 = vmul.f32 %v130_v47, %v580_v0  ;;  %v133_v55 = vstv %s603_s5  ;;  %v59_v1 = vand.u32 2147483647, %v588_v20  ;;  %s658_s11 = sld [smem:[#allocation2 + $0x8]] }
  0x24   :  { %v435_v30 = vpop.eup %434  ;;  %v598_v31 = vadd.f32 1.0, %v433_v28  ;;  %v194_v56 = vstv %s609_s6  ;;  %v410_v59 = vmul.f32 -1.442695, %v237_v50  ;;  %v61_v2 = vand.u32 2147483648, %v588_v20  ;;  %s670_s12 = sld [smem:[#allocation2 + $0x13]] }
  0x25   :  { %v611_v38 = vadd.f32 1.0, %v435_v30  ;;  %v134_v61 = vadd.f32 %v133_v55, %v131_v53  ;;  %v195_v62 = vmul.f32 %v194_v56, %v580_v0  ;;  %v197_v3 = vstv %s618_s7  ;;  %s680_s13 = sld [smem:[#allocation2 + $0x17]] }
  0x26   :  { %440 = vrcp.f32 %v598_v31  ;;  %v123_v9 = vand.u32 2147483647, %v598_v31  ;;  %v265_v11 = vstv %s626_s8  ;;  %vm665_vm3 = vcmp.eq.f32.partialorder %v59_v1, 8.507059e+37  ;;  %s689_s14 = sld [smem:[#allocation2 + $0xe]] }
  0x27   :  { %442 = vpow2.f32 %v397_v29  ;;  %v198_v10 = vadd.f32 %v197_v3, %v195_v62  ;;  %v62_v14 = vor.u32 1.1754944e-38, %v61_v2  ;;  %v125_v15 = vand.u32 2147483648, %v598_v31  ;;  %s700_s15 = sld [smem:[#allocation2 + $0x1d]] }
  0x28   :  { %v601_v33 = vpop.eup %436  ;;  %444 = vrcp.f32 %v611_v38  ;;  %v91_v22 = vand.u32 2147483647, %v611_v38  ;;  %v93_v23 = vand.u32 2147483648, %v611_v38  ;;  %v266_v24 = vmul.f32 %v265_v11, %v580_v0  ;;  %s743_s16 = sld [smem:[#allocation2 + $0x9]] }
  0x29   :  { %v51_v36 = vmul.f32 %v601_v33, %v588_v20  ;;  %v439_v44 = vpop.eup %438  ;;  %446 = vpow2.f32 %v406_v42  ;;  %vm56_vm1 = vweird.f32 %v601_v33  ;;  %v268_v20 = vstv %s634_s9  ;;  %s769_s17 = sld [smem:[#allocation2 + $0x18]] }
  0x2a   :  { %v623_v49 = vadd.f32 1.0, %v439_v44  ;;  %vm647_vm2 = vmor %vm55_vm0, %vm56_vm1  ;;  %vm119_vm4 = vweird.f32 %v598_v31  ;;  %vm685_vm6 = vcmp.eq.f32.partialorder %v123_v9, 8.507059e+37  ;;  %v126_v29 = vor.u32 1.1754944e-38, %v125_v15  ;;  %s841_s18 = sld [smem:[#allocation2 + $0x1e]] }
  0x2b   :  { %v52_v45 = vsub.f32 1.0, %v51_v36  ;;  %v269_v32 = vadd.f32 %v268_v20, %v266_v24  ;;  %v297_v36 = vstv %s651_s10  ;;  %v258_v41 = vstv %s658_s11  ;;  %s848_s19 = sld [smem:[#allocation2 + $0x1f]] }
  0x2c   :  { %v621_v48 = vpop.eup %440  ;;  %448 = vrcp.f32 %v623_v49  ;;  %vm87_vm8 = vweird.f32 %v611_v38  ;;  %vm183_vm10 = vweird.f32 %v623_v49  ;;  %v298_v46 = vmul.f32 %v297_v36, %v580_v0  ;;  %s872_s0 = sld [smem:[#allocation2 + $0x20]] }
  0x2d   :  { %v443_v51 = vpop.eup %442  ;;  %v53_v54 = vmul.f32 %v601_v33, %v52_v45  ;;  %v115_v57 = vmul.f32 %v621_v48, %v598_v31  ;;  %450 = vtanh.f32 %v70_v52  ;;  %vm120_vm5 = vweird.f32 %v621_v48  ;;  %s889_s20 = sld [smem:[#allocation2 + $0x21]] }
  0x2e   :  { %v638_v58 = vadd.f32 1.0, %v443_v51  ;;  %v640_v60 = vpop.eup %444  ;;  %452 = vpow2.f32 %v410_v59  ;;  %vm707_vm7 = vmor %vm119_vm4, %vm120_vm5  ;;  %v187_v31 = vand.u32 2147483647, %v623_v49  ;;  %v415_v44 = vmul.f32 -1.442695, %v269_v32  ;;  %s425_s1 = sld [smem:[#allocation2 + $0x22]] }
  0x2f   :  { %v54_v63 = vadd.f32 %v601_v33, %v53_v54  ;;  %v447_v4 = vpop.eup %446  ;;  %v116_v6 = vsub.f32 1.0, %v115_v57  ;;  %v83_v8 = vmul.f32 %v640_v60, %v611_v38  ;;  %vm88_vm9 = vweird.f32 %v640_v60  ;;  %s426_s21 = sld [smem:[#allocation2 + $0x23]] }
  0x30   :  { %454 = vrcp.f32 %v638_v58  ;;  %v675_v19 = vadd.f32 1.0, %v447_v4  ;;  %v155_v40 = vand.u32 2147483647, %v638_v58  ;;  %v157_v43 = vand.u32 2147483648, %v638_v58 }
  0x31   :  { %456 = vtanh.f32 %v134_v61  ;;  %v58_v12 = vsel %vm647_vm2, %v601_v33, %v54_v63  ;;  %v117_v17 = vmul.f32 %v621_v48, %v116_v6  ;;  %v84_v21 = vsub.f32 1.0, %v83_v8 }
  0x32   :  { %v653_v7 = vpop.eup %448  ;;  %458 = vtanh.f32 %v198_v10  ;;  %v63_v28 = vsel %vm665_vm3, %v62_v14, %v58_v12  ;;  %v300_v47 = vstv %s670_s12  ;;  %vm151_vm11 = vweird.f32 %v638_v58  ;;  %vm784_vm3 = vmor %vm87_vm8, %vm88_vm9 }
  0x33   :  { %v451_v16 = vpop.eup %450  ;;  %v179_v18 = vmul.f32 %v653_v7, %v623_v49  ;;  %v118_v34 = vadd.f32 %v621_v48, %v117_v17  ;;  %460 = vrcp.f32 %v675_v19  ;;  %v85_v37 = vmul.f32 %v640_v60, %v84_v21 }
  0x34   :  { %v453_v25 = vpop.eup %452  ;;  %v98_v45 = vmul.f32 %v451_v16, %v63_v28  ;;  %v259_v53 = vmul.f32 %v258_v41, %v580_v0  ;;  %v189_v55 = vand.u32 2147483648, %v623_v49  ;;  %v261_v56 = vstv %s680_s13 }
  0x35   :  { %v695_v30 = vadd.f32 1.0, %v453_v25  ;;  %v180_v35 = vsub.f32 1.0, %v179_v18  ;;  %v122_v51 = vsel %vm707_vm7, %v621_v48, %v118_v34  ;;  %v732_v54 = vadd.f32 %v640_v60, %v85_v37 }
  0x36   :  { %v691_v27 = vpop.eup %454  ;;  %v301_v57 = vadd.f32 %v300_v47, %v298_v46  ;;  %vm184_vm12 = vweird.f32 %v653_v7  ;;  %vm739_vm13 = vcmp.eq.f32.partialorder %v187_v31, 8.507059e+37  ;;  %v329_v62 = vstv %s689_s14 }
  0x37   :  { %v457_v33 = vpop.eup %456  ;;  %462 = vrcp.f32 %v695_v30  ;;  %v147_v42 = vmul.f32 %v691_v27, %v638_v58  ;;  %v181_v52 = vmul.f32 %v653_v7, %v180_v35  ;;  %v127_v1 = vsel %vm685_vm6, %v126_v29, %v122_v51  ;;  %vm761_vm15 = vmor %vm183_vm10, %vm184_vm12 }
  0x38   :  { %v723_v50 = vpop.eup %458  ;;  %464 = vpow2.f32 %v415_v44  ;;  %v419_v2 = vmul.f32 -1.442695, %v301_v57  ;;  %v330_v3 = vmul.f32 %v329_v62, %v580_v0  ;;  %v262_v6 = vadd.f32 %v261_v56, %v259_v53 }
  0x39   :  { %v736_v59 = vpop.eup %460  ;;  %v148_v61 = vsub.f32 1.0, %v147_v42  ;;  %466 = vtanh.f32 %v98_v45  ;;  %v182_v4 = vadd.f32 %v653_v7, %v181_v52  ;;  %v332_v8 = vstv %s700_s15 }
  0x3a   :  { %vm755_vm14 = vcmp.eq.f32.partialorder %v91_v22, 8.507059e+37  ;;  %v190_v11 = vor.u32 1.1754944e-38, %v189_v55  ;;  %v211_v12 = vmul.f32 %v736_v59, %v675_v19  ;;  %468 = vpow2.f32 %v419_v2 }
  0x3b   :  { %v333_v13 = vadd.f32 %v332_v8, %v330_v3  ;;  %v149_v15 = vmul.f32 %v691_v27, %v148_v61  ;;  %vm152_vm0 = vweird.f32 %v691_v27  ;;  %v162_v16 = vmul.f32 %v457_v33, %v127_v1 }
  0x3c   :  { %vm247_vm1 = vweird.f32 %v695_v30  ;;  %v186_v20 = vsel %vm761_vm15, %v653_v7, %v182_v4  ;;  %v253_v22 = vand.u32 2147483648, %v695_v30  ;;  %470 = vtanh.f32 %v262_v6  ;;  %vm807_vm5 = vmor %vm151_vm11, %vm152_vm0 }
  0x3d   :  { %v746_v63 = vpop.eup %462  ;;  %v424_v18 = vmul.f32 -1.442695, %v333_v13  ;;  %v94_v26 = vor.u32 1.1754944e-38, %v93_v23  ;;  %v212_v28 = vsub.f32 1.0, %v211_v12  ;;  %v251_v7 = vand.u32 2147483647, %v695_v30 }
  0x3e   :  { %v243_v5 = vmul.f32 %v746_v63, %v695_v30  ;;  %v465_v14 = vpop.eup %464  ;;  %vm248_vm2 = vweird.f32 %v746_v63  ;;  %v150_v29 = vadd.f32 %v691_v27, %v149_v15  ;;  %v322_v34 = vstv %s743_s16 }
  0x3f   :  { %v773_v49 = vadd.f32 1.0, %v465_v14  ;;  %v467_v24 = vpop.eup %466  ;;  %vm798_vm4 = vmor %vm247_vm1, %vm248_vm2  ;;  %vm813_vm6 = vcmp.eq.f32.partialorder %v155_v40, 8.507059e+37  ;;  %v158_v30 = vor.u32 1.1754944e-38, %v157_v43  ;;  %v191_v36 = vsel %vm739_vm13, %v190_v11, %v186_v20 }
  0x40   :  { %v244_v17 = vsub.f32 1.0, %v243_v5  ;;  %v469_v38 = vpop.eup %468  ;;  %v90_v37 = vsel %vm784_vm3, %v640_v60, %v732_v54  ;;  %v219_v39 = vand.u32 2147483647, %v675_v19  ;;  %v254_v41 = vor.u32 1.1754944e-38, %v253_v22 }
  0x41   :  { %472 = vrcp.f32 %v773_v49  ;;  %v826_v40 = vadd.f32 1.0, %v469_v38  ;;  %v213_v42 = vmul.f32 %v736_v59, %v212_v28  ;;  %vm252_vm7 = vcmp.eq.f32.partialorder %v251_v7, 8.507059e+37 }
  0x42   :  { %v245_v21 = vmul.f32 %v746_v63, %v244_v17  ;;  %474 = vpow2.f32 %v424_v18  ;;  %v323_v43 = vmul.f32 %v322_v34, %v580_v0  ;;  %v471_v31 = vpop.eup %470  ;;  %v154_v44 = vsel %vm807_vm5, %v691_v27, %v150_v29 }
  0x43   :  { %476 = vtanh.f32 %v162_v16  ;;  %v226_v60 = vmul.f32 %v723_v50, %v191_v36  ;;  %v325_v45 = vstv %s769_s17  ;;  %vm215_vm8 = vweird.f32 %v675_v19 }
  0x44   :  { %v246_v32 = vadd.f32 %v746_v63, %v245_v21  ;;  %478 = vrcp.f32 %v826_v40  ;;  %vm216_vm9 = vweird.f32 %v736_v59  ;;  %v221_v0 = vand.u32 2147483648, %v675_v19 }
  0x45   :  { %v95_v51 = vsel %vm755_vm14, %v94_v26, %v90_v37  ;;  %v159_v53 = vsel %vm813_vm6, %v158_v30, %v154_v44  ;;  %v214_v54 = vadd.f32 %v736_v59, %v213_v42  ;;  %v326_v55 = vadd.f32 %v325_v45, %v323_v43  ;;  %vm857_vm10 = vmor %vm215_vm8, %vm216_vm9 }
  0x46   :  { %v250_v58 = vsel %vm798_vm4, %v746_v63, %v246_v32  ;;  %vm861_vm11 = vcmp.eq.f32.partialorder %v219_v39, 8.507059e+37  ;;  %480 = vtanh.f32 %v226_v60  ;;  %v100_v48 = vmul.f32 %v467_v24, %v95_v51 }
  0x47   :  { %v839_v46 = vpop.eup %472  ;;  %v255_v27 = vsel %vm252_vm7, %v254_v41, %v250_v58  ;;  %v222_v62 = vor.u32 1.1754944e-38, %v221_v0  ;;  %vm279_vm12 = vweird.f32 %v773_v49  ;;  %v218_v4 = vsel %vm857_vm10, %v736_v59, %v214_v54 }
  0x48   :  { %v475_v47 = vpop.eup %474  ;;  %v275_v50 = vmul.f32 %v839_v46, %v773_v49  ;;  %v290_v63 = vmul.f32 %v471_v31, %v255_v27  ;;  %vm280_vm13 = vweird.f32 %v839_v46  ;;  %v285_v5 = vand.u32 2147483648, %v773_v49 }
  0x49   :  { %v477_v52 = vpop.eup %476  ;;  %v855_v56 = vadd.f32 1.0, %v475_v47  ;;  %v283_v9 = vand.u32 2147483647, %v773_v49  ;;  %vm311_vm14 = vweird.f32 %v826_v40  ;;  %v317_v10 = vand.u32 2147483648, %v826_v40  ;;  %vm880_vm15 = vmor %vm279_vm12, %vm280_vm13 }
  0x4a   :  { %v276_v61 = vsub.f32 1.0, %v275_v50  ;;  %v479_v1 = vpop.eup %478  ;;  %v164_v2 = vmul.f32 %v477_v52, %v159_v53  ;;  %v315_v12 = vand.u32 2147483647, %v826_v40  ;;  %v101_v14 = vstv %s841_s18 }
  0x4b   :  { %482 = vrcp.f32 %v855_v56  ;;  %v307_v6 = vmul.f32 %v479_v1, %v826_v40  ;;  %vm312_vm0 = vweird.f32 %v479_v1  ;;  %v165_v15 = vstv %s848_s19 }
  0x4c   :  { %v277_v3 = vmul.f32 %v839_v46, %v276_v61  ;;  %484 = vtanh.f32 %v326_v55  ;;  %v481_v13 = vpop.eup %480  ;;  %v223_v17 = vsel %vm861_vm11, %v222_v62, %v218_v4  ;;  %v286_v49 = vor.u32 1.1754944e-38, %v285_v5  ;;  %vm896_vm2 = vmor %vm311_vm14, %vm312_vm0 }
  0x4d   :  { %486 = vtanh.f32 %v290_v63  ;;  %v308_v59 = vsub.f32 1.0, %v307_v6  ;;  %vm284_vm1 = vcmp.eq.f32.partialorder %v283_v9, 8.507059e+37  ;;  %v318_v22 = vor.u32 1.1754944e-38, %v317_v10 }
  0x4e   :  { %v278_v8 = vadd.f32 %v839_v46, %v277_v3  ;;  %v102_v26 = vmul.f32 %v101_v14, %v100_v48  ;;  %v166_v28 = vmul.f32 %v165_v15, %v164_v2  ;;  %vm316_vm3 = vcmp.eq.f32.partialorder %v315_v12, 8.507059e+37 }
  0x4f   :  { %v309_v18 = vmul.f32 %v479_v1, %v308_v59  ;;  %v228_v29 = vmul.f32 %v481_v13, %v223_v17  ;;  %vm343_vm4 = vweird.f32 %v855_v56  ;;  %v229_v34 = vstv %s872_s0 }
  0x50   :  { %v282_v20 = vsel %vm880_vm15, %v839_v46, %v278_v8  ;;  %v349_v35 = vand.u32 2147483648, %v855_v56  ;;  %v347_v37 = vand.u32 2147483647, %v855_v56  ;;  %v167_v40 = vadd.f32 %v166_v28, %v102_v26 }
  0x51   :  { %v483_v16 = vpop.eup %482  ;;  %v310_v7 = vadd.f32 %v479_v1, %v309_v18  ;;  %v287_v38 = vsel %vm284_vm1, %v286_v49, %v282_v20  ;;  %v230_v42 = vmul.f32 %v229_v34, %v228_v29  ;;  %v293_v31 = vstv %s889_s20 }
  0x52   :  { %v339_v24 = vmul.f32 %v483_v16, %v855_v56  ;;  %v485_v25 = vpop.eup %484  ;;  %vm344_vm5 = vweird.f32 %v483_v16  ;;  %v350_v44 = vor.u32 1.1754944e-38, %v349_v35  ;;  %vm348_vm7 = vcmp.eq.f32.partialorder %v347_v37, 8.507059e+37 }
  0x53   :  { %v487_v33 = vpop.eup %486  ;;  %v314_v23 = vsel %vm896_vm2, %v479_v1, %v310_v7  ;;  %vm907_vm6 = vmor %vm343_vm4, %vm344_vm5  ;;  %v231_v45 = vadd.f32 %v230_v42, %v167_v40  ;;  %v357_v51 = vstv %s425_s1  ;;  %v361_v53 = vstv %s426_s21 }
  0x54   :  { %v340_v32 = vsub.f32 1.0, %v339_v24  ;;  %v319_v30 = vsel %vm316_vm3, %v318_v22, %v314_v23  ;;  %v292_v58 = vmul.f32 %v487_v33, %v287_v38 }
  0x55   :  { %v354_v41 = vmul.f32 %v485_v25, %v319_v30 }
  0x56   :  { %v341_v36 = vmul.f32 %v483_v16, %v340_v32  ;;  %v294_v46 = vmul.f32 %v293_v31, %v292_v58 }
  0x57   :  { %488 = vtanh.f32 %v354_v41 }
  0x58   :  { %v342_v43 = vadd.f32 %v483_v16, %v341_v36  ;;  %v295_v27 = vadd.f32 %v294_v46, %v231_v45 }
  0x5a   :  { %v346_v60 = vsel %vm907_vm6, %v483_v16, %v342_v43 }
  0x5b   :  { %v351_v0 = vsel %vm348_vm7, %v350_v44, %v346_v60 }
  0x5d   :  { %v489_v47 = vpop.eup %488 }
  0x5e   :  { %v356_v50 = vmul.f32 %v489_v47, %v351_v0 }
  0x60   :  { %v358_v52 = vmul.f32 %v357_v51, %v356_v50 }
  0x62   :  { %v359_v54 = vadd.f32 %v358_v52, %v295_v27 }
  0x64   :  { %v362_v55 = vadd.f32 %v361_v53, %v359_v54 }
  0x66   :  { %363 = vst [vmem:[#allocation7] sm:$0xff] %v362_v55 }
  0x67   :  { %374 = dma.vmem_to_hbm [thread:$0]  %s370_s23, 128, %s372_s26, [#allocation4]  }
  0x68   :  { %554 = dma.done.wait [#allocation4], 128  }
  0x69   :  { %555 = vsyncadd [#allocation4], 4294967168 }
  0x6a   :  { %379 = vsyncpa [#allocation3], 1 }
  0x6b   :  { %380 = vsyncpa [#allocation4], 1 }
  0x6c   :  { %381 = vsyncpa [#allocation5], 1 }

</bundles_post_ra>
